<compile_context>
chip_gen: v7x
topology: tpu7x:2x2x1
jax: 0.10.0
libtpu: 0.0.40
codegen_flags: <defaults>
</compile_context>

<pallas_src>
import jax
import jax.numpy as jnp
from jax.experimental import pallas as pl
from jax.experimental.pallas import tpu as pltpu

LANE = 128
SUBLANE = 8


def _round_up(x, m):
    return (x + m - 1) // m * m


def qnetwork_kernel(x_ref, w1_ref, b1_ref, w2_ref, b2_ref, w3_ref, b3_ref, o_ref):
    # Hidden layer 1: relu(x @ W1 + b1)  (bf16 inputs, f32 accumulation)
    h1 = jnp.dot(x_ref[...], w1_ref[...], preferred_element_type=jnp.float32)
    h1 = jnp.maximum(h1 + b1_ref[...], 0.0)
    # Hidden layer 2: relu(h1 @ W2 + b2)
    h2 = jnp.dot(h1.astype(jnp.bfloat16), w2_ref[...], preferred_element_type=jnp.float32)
    h2 = jnp.maximum(h2 + b2_ref[...], 0.0)
    # Output layer: h2 @ W3 + b3  (W3/b3 are zero-padded to a full 128-lane width)
    out = jnp.dot(h2.astype(jnp.bfloat16), w3_ref[...], preferred_element_type=jnp.float32)
    o_ref[...] = (out + b3_ref[...]).astype(o_ref.dtype)


def qnetwork_forward(x, params, *, tile_b=512):
    """params = (w1, b1, w2, b2, w3, b3); weights pre-transposed (in, out), biases (1, out)."""
    w1, b1, w2, b2, w3, b3 = params
    B, S = x.shape
    H1 = w1.shape[1]
    H2 = w2.shape[1]
    A = w3.shape[1]

    # Pad output feature dim to a full lane (128) -> lane-dense stores for width-4 output.
    A_pad = _round_up(A, LANE)
    w3p = jnp.zeros((H2, A_pad), w3.dtype).at[:, :A].set(w3)
    b3p = jnp.zeros((1, A_pad), b3.dtype).at[:, :A].set(b3)

    # Batch tile: multiple of 8 sublanes; pad the batch so the grid divides evenly.
    TB = _round_up(min(tile_b, _round_up(B, SUBLANE)), SUBLANE)
    B_pad = _round_up(B, TB)
    if B_pad != B:
        x = jnp.pad(x, ((0, B_pad - B), (0, 0)))

    # bf16 for streamed x and all weights (halves HBM bytes, native MXU dtype);
    # accumulation stays f32 inside the kernel. Biases stay f32 (VPU add / relu in f32).
    x_bf = x.astype(jnp.bfloat16)
    w1_bf = w1.astype(jnp.bfloat16)
    w2_bf = w2.astype(jnp.bfloat16)
    w3_bf = w3p.astype(jnp.bfloat16)

    grid = (pl.cdiv(B_pad, TB),)
    # Weights/biases: same block for every grid step -> stay resident in VMEM.
    resident = lambda shape: pl.BlockSpec(shape, lambda i: tuple(0 for _ in shape))

    out_padded = pl.pallas_call(
        qnetwork_kernel,
        out_shape=jax.ShapeDtypeStruct((B_pad, A_pad), jnp.float32),
        grid=grid,
        in_specs=[
            pl.BlockSpec((TB, S), lambda i: (i, 0)),       # x: streamed over batch
            resident((S, H1)), resident((1, H1)),           # layer 1
            resident((H1, H2)), resident((1, H2)),          # layer 2
            resident((H2, A_pad)), resident((1, A_pad)),    # output layer (lane-padded)
        ],
        out_specs=pl.BlockSpec((TB, A_pad), lambda i: (i, 0)),
        compiler_params=pltpu.CompilerParams(
            dimension_semantics=("parallel",),              # shard batch across v7x's 2 TCs
        ),
    )(x_bf, w1_bf, b1, w2_bf, b2, w3_bf, b3p)

    return out_padded[:B, :A]


def init_linear(key, fan_in, fan_out):
    # PyTorch nn.Linear default init: U(-1/sqrt(fan_in), 1/sqrt(fan_in)) for W and b.
    kw, kb = jax.random.split(key)
    bound = 1.0 / jnp.sqrt(float(fan_in))
    # Stored pre-transposed: (in, out)
    w = jax.random.uniform(kw, (fan_in, fan_out), jnp.float32, -bound, bound)
    b = jax.random.uniform(kb, (1, fan_out), jnp.float32, -bound, bound)
    return w, b


if __name__ == "__main__":
    state_size = 8
    action_size = 4
    hidden_layers_config = [64, 64]
    batch = 2

    key = jax.random.PRNGKey(0)
    k1, k2, k3, kx = jax.random.split(key, 4)

    w1, b1 = init_linear(k1, state_size, hidden_layers_config[0])
    w2, b2 = init_linear(k2, hidden_layers_config[0], hidden_layers_config[1])
    w3, b3 = init_linear(k3, hidden_layers_config[1], action_size)
    params = (w1, b1, w2, b2, w3, b3)

    x = jax.random.normal(kx, (batch, state_size), jnp.float32)

    out = qnetwork_forward(x, params)
    out = jax.block_until_ready(out)

    # Pure-JAX f32 reference; kernel streams bf16 activations/weights with f32 accumulation,
    # so compare with a tolerance appropriate for bf16 inputs.
    ref = jnp.maximum(x @ w1 + b1, 0.0)
    ref = jnp.maximum(ref @ w2 + b2, 0.0)
    ref = ref @ w3 + b3
    assert out.shape == (batch, action_size)
    assert jnp.allclose(out, ref, atol=3e-2, rtol=3e-2), (out, ref)

    print("KERNEL_OK")
</pallas_src>

<mosaic_0001>
module attributes {stable_mosaic.version = 11 : i64} {
  func.func @qnetwork_kernel(%arg0: i32, %arg1: memref<8x8xbf16, #tpu.memory_space<vmem>>, %arg2: memref<8x64xbf16, #tpu.memory_space<vmem>>, %arg3: memref<1x64xf32, #tpu.memory_space<vmem>>, %arg4: memref<64x64xbf16, #tpu.memory_space<vmem>>, %arg5: memref<1x64xf32, #tpu.memory_space<vmem>>, %arg6: memref<64x128xbf16, #tpu.memory_space<vmem>>, %arg7: memref<1x128xf32, #tpu.memory_space<vmem>>, %arg8: memref<8x128xf32, #tpu.memory_space<vmem>>) attributes {dimension_semantics = [#tpu.dimension_semantics<parallel>], iteration_bounds = array<i64: 1>, scalar_prefetch = 0 : i64, scratch_operands = 0 : i64, tpu.core_type = #tpu.core_type<tc>, window_params = [{transform_indices = @transform_0, window_bounds = array<i64: 8, 8>}, {pipeline_mode = #tpu.pipeline_mode<synchronous>, transform_indices = @transform_1, window_bounds = array<i64: 8, 64>}, {pipeline_mode = #tpu.pipeline_mode<synchronous>, transform_indices = @transform_2, window_bounds = array<i64: 1, 64>}, {pipeline_mode = #tpu.pipeline_mode<synchronous>, transform_indices = @transform_3, window_bounds = array<i64: 64, 64>}, {pipeline_mode = #tpu.pipeline_mode<synchronous>, transform_indices = @transform_4, window_bounds = array<i64: 1, 64>}, {pipeline_mode = #tpu.pipeline_mode<synchronous>, transform_indices = @transform_5, window_bounds = array<i64: 64, 128>}, {pipeline_mode = #tpu.pipeline_mode<synchronous>, transform_indices = @transform_6, window_bounds = array<i64: 1, 128>}, {transform_indices = @transform_7, window_bounds = array<i64: 8, 128>}]} {
    %c0 = arith.constant 0 : index
    %c0_0 = arith.constant 0 : index
    %0 = vector.load %arg1[%c0, %c0_0] : memref<8x8xbf16, #tpu.memory_space<vmem>>, vector<8x8xbf16>
    %c0_1 = arith.constant 0 : index
    %c0_2 = arith.constant 0 : index
    %1 = vector.load %arg2[%c0_1, %c0_2] : memref<8x64xbf16, #tpu.memory_space<vmem>>, vector<8x64xbf16>
    %cst = arith.constant dense<0.000000e+00> : vector<8x64xf32>
    %2 = tpu.matmul %0, %1, %cst {dimension_numbers = #tpu.dot_dimension_numbers<[1], [0], [0], [1], [0, 0, 1, 1], [], []>} : vector<8x8xbf16>, vector<8x64xbf16>, vector<8x64xf32> -> vector<8x64xf32>
    %c0_3 = arith.constant 0 : index
    %c0_4 = arith.constant 0 : index
    %3 = vector.load %arg3[%c0_3, %c0_4] : memref<1x64xf32, #tpu.memory_space<vmem>>, vector<1x64xf32>
    %4 = vector.broadcast %3 : vector<1x64xf32> to vector<8x64xf32>
    %5 = arith.addf %2, %4 : vector<8x64xf32>
    %cst_5 = arith.constant 0.000000e+00 : f32
    %6 = vector.broadcast %cst_5 : f32 to vector<8x64xf32>
    %7 = arith.maximumf %5, %6 : vector<8x64xf32>
    %8 = arith.truncf %7 : vector<8x64xf32> to vector<8x64xbf16>
    %c0_6 = arith.constant 0 : index
    %c0_7 = arith.constant 0 : index
    %9 = vector.load %arg4[%c0_6, %c0_7] : memref<64x64xbf16, #tpu.memory_space<vmem>>, vector<64x64xbf16>
    %cst_8 = arith.constant dense<0.000000e+00> : vector<8x64xf32>
    %10 = tpu.matmul %8, %9, %cst_8 {dimension_numbers = #tpu.dot_dimension_numbers<[1], [0], [0], [1], [0, 0, 1, 1], [], []>} : vector<8x64xbf16>, vector<64x64xbf16>, vector<8x64xf32> -> vector<8x64xf32>
    %c0_9 = arith.constant 0 : index
    %c0_10 = arith.constant 0 : index
    %11 = vector.load %arg5[%c0_9, %c0_10] : memref<1x64xf32, #tpu.memory_space<vmem>>, vector<1x64xf32>
    %12 = vector.broadcast %11 : vector<1x64xf32> to vector<8x64xf32>
    %13 = arith.addf %10, %12 : vector<8x64xf32>
    %cst_11 = arith.constant 0.000000e+00 : f32
    %14 = vector.broadcast %cst_11 : f32 to vector<8x64xf32>
    %15 = arith.maximumf %13, %14 : vector<8x64xf32>
    %16 = arith.truncf %15 : vector<8x64xf32> to vector<8x64xbf16>
    %c0_12 = arith.constant 0 : index
    %c0_13 = arith.constant 0 : index
    %17 = vector.load %arg6[%c0_12, %c0_13] : memref<64x128xbf16, #tpu.memory_space<vmem>>, vector<64x128xbf16>
    %cst_14 = arith.constant dense<0.000000e+00> : vector<8x128xf32>
    %18 = tpu.matmul %16, %17, %cst_14 {dimension_numbers = #tpu.dot_dimension_numbers<[1], [0], [0], [1], [0, 0, 1, 1], [], []>} : vector<8x64xbf16>, vector<64x128xbf16>, vector<8x128xf32> -> vector<8x128xf32>
    %c0_15 = arith.constant 0 : index
    %c0_16 = arith.constant 0 : index
    %19 = vector.load %arg7[%c0_15, %c0_16] : memref<1x128xf32, #tpu.memory_space<vmem>>, vector<1x128xf32>
    %20 = vector.broadcast %19 : vector<1x128xf32> to vector<8x128xf32>
    %21 = arith.addf %18, %20 : vector<8x128xf32>
    %c0_17 = arith.constant 0 : index
    %c0_18 = arith.constant 0 : index
    %22 = vector.load %arg8[%c0_17, %c0_18] : memref<8x128xf32, #tpu.memory_space<vmem>>, vector<8x128xf32>
    tpu.vector_store %arg8[%c0_17, %c0_18], %21 {strides = array<i32>} : memref<8x128xf32, #tpu.memory_space<vmem>>, vector<8x128xf32>,
    return
  }
  func.func @transform_0(%arg0: i32) -> (i32, i32) {
    %c0_i32 = arith.constant 0 : i32
    %c0_i32_0 = arith.constant 0 : i32
    return %arg0, %c0_i32 : i32, i32
  }
  func.func @transform_1(%arg0: i32) -> (i32, i32) {
    %c0_i32 = arith.constant 0 : i32
    %c0_i32_0 = arith.constant 0 : i32
    %c0_i32_1 = arith.constant 0 : i32
    return %c0_i32, %c0_i32_0 : i32, i32
  }
  func.func @transform_2(%arg0: i32) -> (i32, i32) {
    %c0_i32 = arith.constant 0 : i32
    %c0_i32_0 = arith.constant 0 : i32
    %c0_i32_1 = arith.constant 0 : i32
    return %c0_i32, %c0_i32_0 : i32, i32
  }
  func.func @transform_3(%arg0: i32) -> (i32, i32) {
    %c0_i32 = arith.constant 0 : i32
    %c0_i32_0 = arith.constant 0 : i32
    %c0_i32_1 = arith.constant 0 : i32
    return %c0_i32, %c0_i32_0 : i32, i32
  }
  func.func @transform_4(%arg0: i32) -> (i32, i32) {
    %c0_i32 = arith.constant 0 : i32
    %c0_i32_0 = arith.constant 0 : i32
    %c0_i32_1 = arith.constant 0 : i32
    return %c0_i32, %c0_i32_0 : i32, i32
  }
  func.func @transform_5(%arg0: i32) -> (i32, i32) {
    %c0_i32 = arith.constant 0 : i32
    %c0_i32_0 = arith.constant 0 : i32
    %c0_i32_1 = arith.constant 0 : i32
    return %c0_i32, %c0_i32_0 : i32, i32
  }
  func.func @transform_6(%arg0: i32) -> (i32, i32) {
    %c0_i32 = arith.constant 0 : i32
    %c0_i32_0 = arith.constant 0 : i32
    %c0_i32_1 = arith.constant 0 : i32
    return %c0_i32, %c0_i32_0 : i32, i32
  }
  func.func @transform_7(%arg0: i32) -> (i32, i32) {
    %c0_i32 = arith.constant 0 : i32
    %c0_i32_0 = arith.constant 0 : i32
    return %arg0, %c0_i32 : i32, i32
  }
}

</mosaic_0001>

<bundles_post_ra>
// kernel: tpu_custom_call.1
= control target key start
LH: loop header
LB: loop body
LE: loop exit
PB: predicated region body
PF: predicated region fallthrough
CT: control target
= control target key end

     0   :  { %12 = vsyncpa [#allocation3], 0  ;;  %s637_s0 = inlined_call_operand.hbm [shape: bf16[8,8], index: 0, kind: input, shape index: {}]   ;;  %s638_s1 = inlined_call_operand.hbm [shape: bf16[8,64], index: 1, kind: input, shape index: {}]   ;;  %s639_s2 = inlined_call_operand.vmem [shape: f32[1,64], index: 2, kind: input, shape index: {}]   ;;  %s640_s3 = inlined_call_operand.hbm [shape: bf16[64,64], index: 3, kind: input, shape index: {}]   ;;  %s641_s4 = inlined_call_operand.vmem [shape: f32[1,64], index: 4, kind: input, shape index: {}]   ;;  %s642_s5 = inlined_call_operand.hbm [shape: bf16[64,128], index: 5, kind: input, shape index: {}]   ;;  %s643_s6 = inlined_call_operand.vmem [shape: f32[1,128], index: 6, kind: input, shape index: {}]   ;;  %s644_s7 = inlined_call_operand.hbm [shape: f32[8,128], index: 7, kind: output, shape index: {}]  }
   0x1   :  { %13 = vsyncpa [#allocation6], 0 }
   0x2   :  { %14 = vsyncpa [#allocation9], 0 }
   0x3   :  { %15 = vsyncpa [#allocation4], 0  ;;  %s514_s24 = smov [#allocation5]   ;;  %s515_s26 = smov [#allocation2]  }
   0x4   :  { %s32_s25 = sshll.u32 %s514_s24, 4  ;;  %s22_s27 = sshll.u32 %s515_s26, 4  ;;  %s33_s25 = int_to_ptr.vmem [resolvable:$true] %s32_s25  ;;  %s23_s27 = int_to_ptr.vmem [resolvable:$true] %s22_s27 }
   0x5   :  { %s396_s30 = scalar_lea.hbm %s638_s1, 64 }
   0x6   :  { %p397_p0 = scmp.ne.s32.totalorder %s638_s1, %s396_s30  ;;  %p400_p1 = scmp.lt.u32.totalorder %s396_s30, %s638_s1 }
   0x8   :  { %p402_p2 = pnand %p400_p1, %p397_p0 }
   0xa   :  { %405 = shalt.err (!%p402_p2)
}
   0xb   :  { %s406_s12 = scalar_lea.vmem %s33_s25, 64  ;;  %p411_p4 = scmp.lt.s32.totalorder %s33_s25, %s33_s25 }
   0xc   :  { %p407_p3 = scmp.ne.s32.totalorder %s33_s25, %s406_s12  ;;  %p412_p5 = scmp.lt.s32.totalorder %s406_s12, %s406_s12 }
   0xe   :  { %p413_p6 = por %p412_p5, %p411_p4 }
  0x10   :  { %p414_p7 = pnand %p413_p6, %p407_p3 }
  0x12   :  { %417 = shalt.err (!%p414_p7)
}
  0x13   :  { %35 = dma.hbm_to_vmem [thread:$0]  %s638_s1, 64, %s33_s25, [#allocation6]  }
  0x14   :  { %s418_s17 = scalar_lea.hbm %s637_s0, 64 }
  0x15   :  { %p419_p8 = scmp.ne.s32.totalorder %s637_s0, %s418_s17  ;;  %p422_p9 = scmp.lt.u32.totalorder %s418_s17, %s637_s0 }
  0x17   :  { %p424_p10 = pnand %p422_p9, %p419_p8 }
  0x19   :  { %427 = shalt.err (!%p424_p10)
}
  0x1a   :  { %s428_s22 = scalar_lea.vmem %s23_s27, 64  ;;  %p433_p12 = scmp.lt.s32.totalorder %s23_s27, %s23_s27 }
  0x1b   :  { %p429_p11 = scmp.ne.s32.totalorder %s23_s27, %s428_s22  ;;  %p434_p13 = scmp.lt.s32.totalorder %s428_s22, %s428_s22 }
  0x1d   :  { %p435_p0 = por %p434_p13, %p433_p12 }
  0x1f   :  { %p436_p1 = pnand %p435_p0, %p429_p11 }
  0x21   :  { %439 = shalt.err (!%p436_p1)
}
  0x22   :  { %25 = dma.hbm_to_vmem [thread:$0]  %s637_s0, 64, %s23_s27, [#allocation3]  }
  0x23   :  { %s516_s24 = smov [#allocation7]   ;;  %s440_s29 = scalar_lea.hbm %s640_s3, 512 }
  0x24   :  { %s43_s25 = sshll.u32 %s516_s24, 4  ;;  %p441_p2 = scmp.ne.s32.totalorder %s640_s3, %s440_s29  ;;  %s44_s25 = int_to_ptr.vmem [resolvable:$true] %s43_s25 }
  0x25   :  { %p444_p3 = scmp.lt.u32.totalorder %s440_s29, %s640_s3 }
  0x27   :  { %p446_p4 = pnand %p444_p3, %p441_p2 }
  0x29   :  { %449 = shalt.err (!%p446_p4)
}
  0x2a   :  { %s450_s11 = scalar_lea.vmem %s44_s25, 512  ;;  %p455_p6 = scmp.lt.s32.totalorder %s44_s25, %s44_s25 }
  0x2b   :  { %p451_p5 = scmp.ne.s32.totalorder %s44_s25, %s450_s11  ;;  %p456_p7 = scmp.lt.s32.totalorder %s450_s11, %s450_s11 }
  0x2d   :  { %p457_p8 = por %p456_p7, %p455_p6 }
  0x2f   :  { %p458_p9 = pnand %p457_p8, %p451_p5 }
  0x31   :  { %461 = shalt.err (!%p458_p9)
}
  0x32   :  { %s517_s0 = smov 64   ;;  %s518_s27 = smov 4  }
  0x33   :  { %49 = dma.hbm_to_vmem [thread:$0]  %s640_s3, 512, %s44_s25, [#allocation6], %s517_s0, %s517_s0, %s518_s27  }
  0x34   :  { %s519_s14 = smov [#allocation8]   ;;  %s462_s18 = scalar_lea.hbm %s642_s5, 512 }
  0x35   :  { %s57_s15 = sshll.u32 %s519_s14, 4  ;;  %p463_p10 = scmp.ne.s32.totalorder %s642_s5, %s462_s18  ;;  %s58_s15 = int_to_ptr.vmem [resolvable:$true] %s57_s15 }
  0x36   :  { %p466_p11 = scmp.lt.u32.totalorder %s462_s18, %s642_s5 }
  0x38   :  { %p468_p12 = pnand %p466_p11, %p463_p10 }
  0x3a   :  { %471 = shalt.err (!%p468_p12)
}
  0x3b   :  { %s472_s1 = scalar_lea.vmem %s58_s15, 512  ;;  %p477_p0 = scmp.lt.s32.totalorder %s58_s15, %s58_s15 }
  0x3c   :  { %p473_p13 = scmp.ne.s32.totalorder %s58_s15, %s472_s1  ;;  %p478_p1 = scmp.lt.s32.totalorder %s472_s1, %s472_s1 }
  0x3e   :  { %p479_p2 = por %p478_p1, %p477_p0 }
  0x40   :  { %p480_p3 = pnand %p479_p2, %p473_p13 }
  0x42   :  { %483 = shalt.err (!%p480_p3)
}
  0x43   :  { %63 = dma.hbm_to_vmem [thread:$0]  %s642_s5, 512, %s58_s15, [#allocation9], %s517_s0, %s517_s0, %s518_s27  }
  0x44   :  { %506 = dma.done.wait [#allocation3], 64  }
  0x45   :  { %507 = vsyncadd [#allocation3], 4294967232 }
  0x46   :  { %508 = dma.done.wait [#allocation6], 576  }
  0x47   :  { %509 = vsyncadd [#allocation6], 4294966720 }
  0x48   :  { %510 = dma.done.wait [#allocation9], 512  }
  0x49   :  { %511 = vsyncadd [#allocation9], 4294966784  ;;  %v520_v0 = vmov 0.0   ;;  %vm521_vm0 = vmmov 0   ;;  %vm92_vm1 = vcmask 1043456   ;;  %v388_v3 = vld [vmem:[#allocation7] sm:$0xff]  }
  0x4a   :  { %349 = vmatprep.subr.bf16.mxu0 %v520_v0  ;;  %351 = vmatprep.mubr.msk.bf16.mxu0 %vm521_vm0, %v520_v0  ;;  %v80_v1 = vld [vmem:[#allocation5] sm:$0xf]  ;;  %v79_v4 = vld [vmem:[#allocation2] sm:$0xf]  ;;  %vm88_vm2 = vcmask 64512   ;;  %v389_v5 = vld [vmem:[#allocation7 + $0x8] sm:$0xff]  }
  0x4b   :  { %355 = vmatprep.subr.bf16.mxu1 %v520_v0  ;;  %363 = vmatprep.mubr.msk.bf16.mxu1 %vm521_vm0, %v520_v0  ;;  %v94_v2 = vsel %vm92_vm1, %v80_v1, 0  ;;  %v390_v6 = vld [vmem:[#allocation7 + $0x10] sm:$0xff]   ;;  %v391_v7 = vld [vmem:[#allocation7 + $0x18] sm:$0xff]   ;;  %v392_v8 = vld [vmem:[#allocation8] sm:$0xff]   ;;  %vm177_vm3 = vcmask 523264   ;;  %s522_s29 = smov [#allocation10]  }
  0x4c   :  { %350 = vmatpush3.bf16.msra.mxu0 %v94_v2  ;;  %356 = vmatpush3.bf16.msra.mxu1 %v388_v3  ;;  %v393_v9 = vld [vmem:[#allocation8 + $0x8] sm:$0xff]   ;;  %v323_v10 = vld [vmem:[%s639_s2] ss:$0 sm:$0xff]  ;;  %v394_v18 = vld [vmem:[#allocation8 + $0x10] sm:$0xff]   ;;  %s312_s30 = sshll.u32 %s522_s29, 4  ;;  %s313_s30 = int_to_ptr.vmem [resolvable:$true] %s312_s30 }
  0x4d   :  { %367 = vmatprep.subr.bf16.mxu0 %v520_v0  ;;  %357 = vmatprep.subr.bf16.mxu1 %v520_v0  ;;  %v395_v19 = vld [vmem:[#allocation8 + $0x18] sm:$0xff]   ;;  %p489_p5 = scmp.lt.s32.totalorder %s313_s30, %s313_s30 }
  0x4e   :  { %v325_v20 = vld [vmem:[%s641_s4] ss:$0 sm:$0xff]  ;;  %s484_s4 = scalar_lea.vmem %s313_s30, 128 }
  0x4f   :  { %352 = vmatmul.mubr.msk.bf16.vlgmr.msra.gmra.mrb[0].mxu0 %vm88_vm2, %v79_v4  ;;  %v331_v28 = vld [vmem:[%s643_s6] ss:$0 sm:$0xff]  ;;  %p485_p4 = scmp.ne.s32.totalorder %s313_s30, %s484_s4  ;;  %p490_p6 = scmp.lt.s32.totalorder %s484_s4, %s484_s4 }
  0x50   :  { %375 = vmatprep.mubr.msk.bf16.mxu0 %vm521_vm0, %v520_v0  ;;  %358 = vmatpush3.bf16.msra.mxu1 %v389_v5 }
  0x51   :  { %359 = vmatprep.subr.bf16.mxu1 %v520_v0  ;;  %368 = vmatpush3.bf16.msra.mxu0 %v392_v8  ;;  %p491_p7 = por %p490_p6, %p489_p5 }
  0x52   :  { %369 = vmatprep.subr.bf16.mxu0 %v520_v0 }
  0x53   :  { %p492_p8 = pnand %p491_p7, %p485_p4 }
  0x54   :  { %360 = vmatpush3.bf16.msra.mxu1 %v390_v6 }
  0x55   :  { %361 = vmatprep.subr.bf16.mxu1 %v520_v0  ;;  %370 = vmatpush3.bf16.msra.mxu0 %v393_v9 }
  0x56   :  { %371 = vmatprep.subr.bf16.mxu0 %v520_v0 }
  0x58   :  { %362 = vmatpush3.bf16.msra.mxu1 %v391_v7 }
  0x59   :  { %372 = vmatpush3.bf16.msra.mxu0 %v394_v18 }
  0x5a   :  { %373 = vmatprep.subr.bf16.mxu0 %v520_v0 }
  0x5d   :  { %374 = vmatpush3.bf16.msra.mxu0 %v395_v19 }
 0x122   :  { %v130_v11 = vpop.f32.mrb[0].mxu0 }
 0x123   :  { %v131_v12 = vadd.f32 %v323_v10, %v130_v11  ;;  %v353_v13 = vpop.f32.mrb[1].mxu0 }
 0x124   :  { %v133_v14 = vpop.f32.mrb[2].mxu0 }
 0x125   :  { %v136_v15 = vmax.f32 %v131_v12, 0.0  ;;  %v354_v16 = vpop.f32.mrb[3].mxu0 }
 0x127   :  { %v137_v17 = vpack.c.bf16 %v136_v15, %v136_v15 }
 0x129   :  { %364 = vmatmul.mubr.msk.bf16.vlgmr.msra.gmra.mrb[0].mxu1 %vm177_vm3, %v137_v17 }
 0x1fc   :  { %v215_v21 = vpop.f32.mrb[0].mxu1 }
 0x1fd   :  { %v216_v22 = vadd.f32 %v325_v20, %v215_v21  ;;  %v365_v23 = vpop.f32.mrb[1].mxu1 }
 0x1fe   :  { %v218_v24 = vpop.f32.mrb[2].mxu1 }
 0x1ff   :  { %v221_v25 = vmax.f32 %v216_v22, 0.0  ;;  %v366_v26 = vpop.f32.mrb[3].mxu1 }
 0x201   :  { %v222_v27 = vpack.c.bf16 %v221_v25, %v221_v25 }
 0x203   :  { %376 = vmatmul.mubr.msk.bf16.vlgmr.msra.gmra.mrb[4].mxu0 %vm177_vm3, %v222_v27 }
 0x2d6   :  { %v299_v29 = vpop.f32.mrb[4].mxu0 }
 0x2d7   :  { %v300_v30 = vadd.f32 %v331_v28, %v299_v29  ;;  %v377_v31 = vpop.f32.mrb[5].mxu0 }
 0x2d8   :  { %v302_v32 = vpop.f32.mrb[6].mxu0 }
 0x2d9   :  { %305 = vst [vmem:[#allocation10] sm:$0xff] %v300_v30  ;;  %v378_v33 = vpop.f32.mrb[7].mxu0 }
 0x2da   :  { %495 = shalt.err (!%p492_p8)
}
 0x2db   :  { %s496_s6 = scalar_lea.hbm %s644_s7, 128 }
 0x2dc   :  { %p497_p9 = scmp.ne.s32.totalorder %s644_s7, %s496_s6  ;;  %p500_p10 = scmp.lt.u32.totalorder %s496_s6, %s644_s7 }
 0x2de   :  { %p502_p11 = pnand %p500_p10, %p497_p9 }
 0x2e0   :  { %505 = shalt.err (!%p502_p11)
}
 0x2e1   :  { %315 = dma.vmem_to_hbm [thread:$0]  %s313_s30, 128, %s644_s7, [#allocation4]  }
 0x2e2   :  { %512 = dma.done.wait [#allocation4], 128  }
 0x2e3   :  { %513 = vsyncadd [#allocation4], 4294967168 }
 0x2e4   :  { %319 = vsyncpa [#allocation3], 1 }
 0x2e5   :  { %320 = vsyncpa [#allocation6], 1 }
 0x2e6   :  { %321 = vsyncpa [#allocation9], 1 }
 0x2e7   :  { %322 = vsyncpa [#allocation4], 1 }

</bundles_post_ra>
